<compile_context>
chip_gen: v6e
topology: v6e:2x2x1
jax: 0.10.0
libtpu: 0.0.40
codegen_flags: <defaults>
</compile_context>

<pallas_src>
import math

import jax
import jax.numpy as jnp
from jax.experimental import pallas as pl
from jax.experimental.pallas import tpu as pltpu


def _round_up(x, m):
    return (x + m - 1) // m * m


def _embed_onehot(flat_ids, lut, scale, block_tokens=256):
    """Small-vocab path: one-hot MXU matmul against a VMEM-resident LUT."""
    n_tok = flat_ids.shape[0]
    vocab, n_units = lut.shape
    T = min(block_tokens, _round_up(n_tok, 8))          # tokens per grid step
    n_pad = _round_up(n_tok, T)
    n_blocks = n_pad // T
    ids_2d = jnp.pad(flat_ids, (0, n_pad - n_tok)).reshape(n_pad, 1)

    def kernel(ids_ref, lut_ref, out_ref):
        ids = ids_ref[...]                                          # (T, 1) i32
        cols = jax.lax.broadcasted_iota(jnp.int32, (T, vocab), 1)   # (T, vocab)
        one_hot = (cols == ids).astype(lut_ref.dtype)
        emb = jnp.dot(one_hot, lut_ref[...],
                      preferred_element_type=jnp.float32)
        # Keep the scale in-kernel: memory-bound, the VPU multiply is free.
        out_ref[...] = (emb * scale).astype(out_ref.dtype)

    out = pl.pallas_call(
        kernel,
        out_shape=jax.ShapeDtypeStruct((n_pad, n_units), lut.dtype),
        grid_spec=pltpu.PrefetchScalarGridSpec(
            num_scalar_prefetch=0,
            grid=(n_blocks,),
            in_specs=[
                pl.BlockSpec((T, 1), lambda i: (i, 0)),
                pl.BlockSpec((vocab, n_units), lambda i: (0, 0)),  # resident LUT
            ],
            out_specs=pl.BlockSpec((T, n_units), lambda i: (i, 0)),
        ),
        compiler_params=pltpu.CompilerParams(
            dimension_semantics=("parallel",),
        ),
    )(ids_2d, lut)
    return out[:n_tok]


def _embed_gather(flat_ids, lut, scale, block_tokens=512, chunk_tokens=128):
    """Large-vocab path: batched, double-buffered HBM row-gather via DMAs."""
    n_tok = flat_ids.shape[0]
    _, n_units = lut.shape
    T = min(block_tokens, _round_up(n_tok, 8))           # tokens per grid step
    C = math.gcd(T, chunk_tokens)                        # tokens per DMA chunk
    n_chunks = T // C
    n_pad = _round_up(n_tok, T)
    n_blocks = n_pad // T
    ids_pad = jnp.pad(flat_ids, (0, n_pad - n_tok))      # pad with id 0 (valid)

    itemsize = jnp.dtype(lut.dtype).itemsize
    # 2 output pipeline buffers + 2-slot gather scratch; keep it v7x-safe.
    vmem_needed = (2 * T + 2 * C) * n_units * itemsize
    vmem_limit = int(min(64 * 1024 * 1024,
                         max(32 * 1024 * 1024, vmem_needed + (8 << 20))))

    def kernel(ids_smem, lut_hbm, out_ref, buf, sem):
        blk = pl.program_id(0)
        base = blk * T

        def issue(chunk, slot):
            off = chunk * C

            @pl.loop(0, C)
            def _(t):
                # Out-of-range ids surface via DMA bounds checking
                # (xla_jf_bounds_check defaults to DMA).
                row = ids_smem[base + off + t]
                pltpu.make_async_copy(
                    lut_hbm.at[pl.ds(row, 1)],
                    buf.at[pl.ds(slot * C + t, 1)],
                    sem.at[slot],
                ).start()

        issue(0, 0)  # prime chunk 0 of this block (self-contained per step)

        @pl.loop(0, n_chunks)
        def _(c):
            slot = c & 1

            @pl.when(c + 1 < n_chunks)
            def _():
                issue(c + 1, 1 - slot)

            # Drain the C single-row DMAs of the current chunk: each wait
            # matches one issued (1, n_units) copy on this slot's semaphore.
            @pl.loop(0, C)
            def _(t):
                pltpu.make_async_copy(
                    lut_hbm.at[pl.ds(0, 1)],
                    buf.at[pl.ds(0, 1)],
                    sem.at[slot],
                ).wait()

            start = pl.multiple_of(slot * C, C)
            rows = buf[pl.ds(start, C), :]
            out_ref[pl.ds(pl.multiple_of(c * C, C), C), :] = (
                rows * scale).astype(out_ref.dtype)

    out = pl.pallas_call(
        kernel,
        out_shape=jax.ShapeDtypeStruct((n_pad, n_units), lut.dtype),
        grid_spec=pltpu.PrefetchScalarGridSpec(
            num_scalar_prefetch=1,                        # flat ids -> SMEM
            grid=(n_blocks,),
            in_specs=[pl.BlockSpec(memory_space=pl.ANY)],  # LUT stays in HBM
            out_specs=pl.BlockSpec((T, n_units), lambda i, ids: (i, 0)),
            scratch_shapes=[
                pltpu.VMEM((2 * C, n_units), lut.dtype),   # 2-slot gather buffer
                pltpu.SemaphoreType.DMA((2,)),
            ],
        ),
        compiler_params=pltpu.CompilerParams(
            dimension_semantics=("parallel",),
            vmem_limit_bytes=vmem_limit,
        ),
    )(ids_pad, lut)
    return out[:n_tok]


def word_embedding_pallas(ids, lut, n_units=None, *, method=None):
    """ids: (B, S) integer ids; lut: (vocab, n_units) -> (B, S, n_units)."""
    vocab, d = lut.shape
    if n_units is None:
        n_units = d
    assert d == n_units
    B, S = ids.shape
    scale = math.sqrt(n_units)
    flat = ids.reshape(-1).astype(jnp.int32)

    if method is None:
        table_bytes = vocab * d * jnp.dtype(lut.dtype).itemsize
        method = "onehot" if (vocab <= 2048 and table_bytes <= (4 << 20)) else "gather"

    if method == "onehot":
        out_flat = _embed_onehot(flat, lut, scale)
    else:
        out_flat = _embed_gather(flat, lut, scale)

    # TODO(synk): the PyTorch module prints 'NAN!!' when the lookup contains
    # NaNs; that host-side print side effect is not reproduced here.
    return out_flat.reshape(B, S, n_units)


if __name__ == "__main__":
    key = jax.random.PRNGKey(0)
    k1, k2, k3, k4 = jax.random.split(key, 4)

    # Case 1: module-scale shapes, small vocab -> one-hot MXU path.
    B, S, vocab, n_units = 2, 8, 64, 128
    lut = jax.random.normal(k1, (vocab, n_units), dtype=jnp.float32)
    ids = jax.random.randint(k2, (B, S), minval=0, maxval=vocab, dtype=jnp.int32)
    out = jax.block_until_ready(word_embedding_pallas(ids, lut, n_units))
    ref = jnp.take(lut, ids, axis=0) * math.sqrt(n_units)
    assert out.shape == (B, S, n_units)
    # MXU default precision may run f32 operands through bf16 passes, so allow
    # ~1e-2 relative slack on the matmul path.
    assert jnp.allclose(out, ref, atol=1e-2, rtol=1e-2), "onehot path mismatch"

    # Case 2: larger vocab -> batched, double-buffered HBM row-gather path.
    B2, S2, vocab2, d2 = 4, 128, 4096, 128
    lut2 = jax.random.normal(k3, (vocab2, d2), dtype=jnp.float32)
    ids2 = jax.random.randint(k4, (B2, S2), minval=0, maxval=vocab2, dtype=jnp.int32)
    out2 = jax.block_until_ready(word_embedding_pallas(ids2, lut2, d2))
    ref2 = jnp.take(lut2, ids2, axis=0) * math.sqrt(d2)
    assert out2.shape == (B2, S2, d2)
    assert jnp.allclose(out2, ref2, atol=1e-5, rtol=1e-5), "gather path mismatch"

    print("KERNEL_OK")
</pallas_src>

<mosaic_0001>
module attributes {stable_mosaic.version = 11 : i64} {
  func.func @kernel(%arg0: i32, %arg1: memref<16x1xi32, #tpu.memory_space<vmem>>, %arg2: memref<64x128xf32, #tpu.memory_space<vmem>>, %arg3: memref<16x128xf32, #tpu.memory_space<vmem>>) attributes {dimension_semantics = [#tpu.dimension_semantics<parallel>], iteration_bounds = array<i64: 1>, scalar_prefetch = 0 : i64, scratch_operands = 0 : i64, tpu.core_type = #tpu.core_type<tc>, window_params = [{transform_indices = @transform_0, window_bounds = array<i64: 16, 1>}, {pipeline_mode = #tpu.pipeline_mode<synchronous>, transform_indices = @transform_1, window_bounds = array<i64: 64, 128>}, {transform_indices = @transform_2, window_bounds = array<i64: 16, 128>}]} {
    %c0 = arith.constant 0 : index
    %c0_0 = arith.constant 0 : index
    %0 = vector.load %arg1[%c0, %c0_0] : memref<16x1xi32, #tpu.memory_space<vmem>>, vector<16x1xi32>
    %1 = tpu.iota {dimensions = array<i32: 1>} : vector<16x64xi32>
    %2 = vector.broadcast %0 : vector<16x1xi32> to vector<16x64xi32>
    %3 = arith.cmpi eq, %1, %2 : vector<16x64xi32>
    %4 = arith.extui %3 : vector<16x64xi1> to vector<16x64xi32>
    %5 = arith.sitofp %4 : vector<16x64xi32> to vector<16x64xf32>
    %c0_1 = arith.constant 0 : index
    %c0_2 = arith.constant 0 : index
    %6 = vector.load %arg2[%c0_1, %c0_2] : memref<64x128xf32, #tpu.memory_space<vmem>>, vector<64x128xf32>
    %cst = arith.constant dense<0.000000e+00> : vector<16x128xf32>
    %7 = tpu.matmul %5, %6, %cst {dimension_numbers = #tpu.dot_dimension_numbers<[1], [0], [0], [1], [0, 0, 1, 1], [], []>} : vector<16x64xf32>, vector<64x128xf32>, vector<16x128xf32> -> vector<16x128xf32>
    %cst_3 = arith.constant 11.3137083 : f32
    %8 = vector.broadcast %cst_3 : f32 to vector<16x128xf32>
    %9 = arith.mulf %7, %8 : vector<16x128xf32>
    %c0_4 = arith.constant 0 : index
    %c0_5 = arith.constant 0 : index
    %10 = vector.load %arg3[%c0_4, %c0_5] : memref<16x128xf32, #tpu.memory_space<vmem>>, vector<16x128xf32>
    tpu.vector_store %arg3[%c0_4, %c0_5], %9 {strides = array<i32>} : memref<16x128xf32, #tpu.memory_space<vmem>>, vector<16x128xf32>,
    return
  }
  func.func @transform_0(%arg0: i32) -> (i32, i32) {
    %c0_i32 = arith.constant 0 : i32
    %c0_i32_0 = arith.constant 0 : i32
    return %arg0, %c0_i32 : i32, i32
  }
  func.func @transform_1(%arg0: i32) -> (i32, i32) {
    %c0_i32 = arith.constant 0 : i32
    %c0_i32_0 = arith.constant 0 : i32
    %c0_i32_1 = arith.constant 0 : i32
    return %c0_i32, %c0_i32_0 : i32, i32
  }
  func.func @transform_2(%arg0: i32) -> (i32, i32) {
    %c0_i32 = arith.constant 0 : i32
    %c0_i32_0 = arith.constant 0 : i32
    return %arg0, %c0_i32 : i32, i32
  }
}

</mosaic_0001>

<bundles_post_ra>
// kernel: tpu_custom_call.1
= control target key start
LH: loop header
LB: loop body
LE: loop exit
PB: predicated region body
PF: predicated region fallthrough
CT: control target
= control target key end

     0   :  { %7 = vsyncpa [#allocation3], 0  ;;  %s276_s0 = inlined_call_operand.vmem [shape: s32[16,1], index: 0, kind: input, shape index: {}]   ;;  %s277_s1 = inlined_call_operand.hbm [shape: f32[64,128], index: 1, kind: input, shape index: {}]   ;;  %s278_s2 = inlined_call_operand.hbm [shape: f32[16,128], index: 2, kind: output, shape index: {}]  }
   0x1   :  { %8 = vsyncpa [#allocation4], 0  ;;  %s237_s9 = smov [#allocation2]  }
   0x2   :  { %s16_s10 = sshll.u32 %s237_s9, 4  ;;  %s17_s10 = int_to_ptr.vmem [resolvable:$true] %s16_s10 }
   0x3   :  { %s201_s11 = scalar_lea.vmem %s17_s10, 1024  ;;  %p206_p1 = scmp.lt.s32.totalorder %s17_s10, %s17_s10 }
   0x4   :  { %p202_p0 = scmp.ne.s32.totalorder %s17_s10, %s201_s11  ;;  %p207_p2 = scmp.lt.s32.totalorder %s201_s11, %s201_s11 }
   0x6   :  { %p208_p3 = por %p207_p2, %p206_p1 }
   0x8   :  { %p209_p4 = pnand %p208_p3, %p202_p0 }
   0xa   :  { %212 = shalt.err (!%p209_p4)
}
   0xb   :  { %s238_s12 = smov 128   ;;  %s239_s13 = smov 8  }
   0xc   :  { %22 = dma.hbm_to_vmem [thread:$0]  %s277_s1, 1024, %s17_s10, [#allocation3], %s238_s12, %s238_s12, %s239_s13  }
   0xd   :  { %233 = dma.done.wait [#allocation3], 1024  }
   0xe   :  { %234 = vsyncadd [#allocation3], 4294966272  ;;  %v240_v0 = vmov 0   ;;  %v26_v1 = vld [vmem:[%s276_s0] sm:$0xff]  ;;  %v49_v2 = vld [vmem:[#allocation2 + $0x38] sm:$0xff]  ;;  %v28_v11 = vlaneseq  ;;  %vm50_vm0 = vcmask 523264  }
   0xf   :  { %192 = vset.pattern.permute.xlu0 %v240_v0  ;;  %167 = vmatprep.subr.mxu0 %v49_v2  ;;  %v48_v3 = vld [vmem:[#allocation2 + $0x30] sm:$0xff]  ;;  %v27_v4 = vld [vmem:[%s276_s0 + $0x8] sm:$0xff]  ;;  %v46_v6 = vld [vmem:[#allocation2 + $0x20] sm:$0xff]  ;;  %v241_v14 = vmov 0.0   ;;  %s242_s0 = smov [#allocation5]  }
  0x10   :  { %31 = vperm.xlu0 %192, %v26_v1   ;;  %168 = vmatpush3.msra.mxu0 %v49_v2  ;;  %v47_v5 = vld [vmem:[#allocation2 + $0x28] sm:$0xff]  ;;  %v45_v7 = vld [vmem:[#allocation2 + $0x18] sm:$0xff]  ;;  %v44_v8 = vld [vmem:[#allocation2 + $0x10] sm:$0xff]  ;;  %v29_v12 = vand.u32 127, %v28_v11  ;;  %s141_s1 = sshll.u32 %s242_s0, 4  ;;  %s142_s1 = int_to_ptr.vmem [resolvable:$true] %s141_s1 }
  0x11   :  { %169 = vmatprep.subr.mxu0 %v48_v3  ;;  %v43_v9 = vld [vmem:[#allocation2 + $0x8] sm:$0xff]  ;;  %v42_v10 = vld [vmem:[#allocation2] sm:$0xff]  ;;  %s213_s20 = scalar_lea.vmem %s142_s1, 256  ;;  %p218_p6 = scmp.lt.s32.totalorder %s142_s1, %s142_s1 }
  0x12   :  { %170 = vmatpush3.msra.mxu0 %v48_v3  ;;  %p214_p5 = scmp.ne.s32.totalorder %s142_s1, %s213_s20  ;;  %p219_p7 = scmp.lt.s32.totalorder %s213_s20, %s213_s20 }
  0x13   :  { %171 = vmatprep.subr.mxu0 %v47_v5 }
  0x14   :  { %34 = vperm.xlu0 %192, %v27_v4   ;;  %172 = vmatpush3.msra.mxu0 %v47_v5  ;;  %p220_p8 = por %p219_p7, %p218_p6 }
  0x15   :  { %173 = vmatprep.subr.mxu0 %v46_v6 }
  0x16   :  { %174 = vmatpush3.msra.mxu0 %v46_v6  ;;  %p221_p9 = pnand %p220_p8, %p214_p5 }
  0x17   :  { %175 = vmatprep.subr.mxu0 %v45_v7 }
  0x18   :  { %176 = vmatpush3.msra.mxu0 %v45_v7 }
  0x19   :  { %177 = vmatprep.subr.mxu0 %v44_v8 }
  0x1a   :  { %178 = vmatpush3.msra.mxu0 %v44_v8 }
  0x1b   :  { %179 = vmatprep.subr.mxu0 %v43_v9 }
  0x1c   :  { %180 = vmatpush3.msra.mxu0 %v43_v9 }
  0x1d   :  { %181 = vmatprep.subr.mxu0 %v42_v10 }
  0x1e   :  { %182 = vmatpush3.msra.mxu0 %v42_v10 }
  0x8b   :  { %v32_v13 = vpop.permute.xlu0 %31 }
  0x8c   :  { %vm36_vm1 = vcmp.eq.s32.totalorder %v29_v12, %v32_v13 }
  0x8d   :  { %v153_v15 = vsel %vm36_vm1, 1.0, %v241_v14 }
  0x8e   :  { %183 = vmatprep.mubr.msk.f32.mxu0 %vm50_vm0, %v153_v15 }
  0x8f   :  { %v35_v16 = vpop.permute.xlu0 %34 }
  0x90   :  { %vm37_vm2 = vcmp.eq.s32.totalorder %v29_v12, %v35_v16 }
  0x91   :  { %v154_v17 = vsel %vm37_vm2, 1.0, %v241_v14 }
  0x92   :  { %184 = vmatmul.mubr.msk.f32.vlgmr.msra.gmra.mxu0 %vm50_vm0, %v154_v17 }
 0x152   :  { %v185_v18 = vpop.f32.mrf.mxu0 }
 0x153   :  { %v133_v19 = vmul.f32 11.313708, %v185_v18 }
 0x154   :  { %v123_v20 = vpop.f32.mrf.mxu0 }
 0x155   :  { %135 = vst [vmem:[#allocation5 + $0x8] sm:$0xff] %v133_v19  ;;  %v132_v21 = vmul.f32 11.313708, %v123_v20 }
 0x157   :  { %134 = vst [vmem:[#allocation5] sm:$0xff] %v132_v21 }
 0x158   :  { %224 = shalt.err (!%p221_p9)
}
 0x159   :  { %147 = dma.vmem_to_hbm [thread:$0]  %s142_s1, 256, %s278_s2, [#allocation4], %s238_s12, %s238_s12, %s239_s13  }
 0x15a   :  { %235 = dma.done.wait [#allocation4], 256  }
 0x15b   :  { %236 = vsyncadd [#allocation4], 4294967040 }
 0x15c   :  { %151 = vsyncpa [#allocation3], 1 }
 0x15d   :  { %152 = vsyncpa [#allocation4], 1 }

</bundles_post_ra>
